<compile_context>
chip_gen: v7x
topology: tpu7x:2x2x1
jax: 0.10.0
libtpu: 0.0.40
codegen_flags: <defaults>
</compile_context>

<pallas_src>
import math

import jax
import jax.numpy as jnp
from jax.experimental import pallas as pl
from jax.experimental.pallas import tpu as pltpu


# --------------------------------------------------------------------------- #
# Kernel
# --------------------------------------------------------------------------- #
def _make_kernel(mxu_precision):
    def attn_pool_kernel(hs_ref, wt_ref, b_ref, q_ref, out_ref):
        tb, s_len, h = hs_ref.shape
        hs = hs_ref[...]                                     # (TB,S,H) compute dtype

        # Key projection: one lane-dense (TB*S, H) @ (H, H) MXU matmul with an
        # f32 accumulator. No full-block upcast of the activations.
        x = hs.reshape(tb * s_len, h)
        z = jnp.dot(x, wt_ref[...], preferred_element_type=jnp.float32,
                    precision=mxu_precision)
        z = z + b_ref[...].astype(jnp.float32)               # (TB*S, H) f32

        # tanh and the big elementwise multiplies stay in the compute dtype
        # (bf16 EUP/VPU on v6e/v7x; transparently f32 when the input is f32,
        # which is what v5e wants for its non-bf16 VPU/EUP).
        t = jnp.tanh(z).astype(hs.dtype).reshape(tb, s_len, h)

        # scores = tanh(.) . query : VPU multiply + f32 lane reduction
        # (avoids an N=1 MXU matvec and a lane-1 store).
        scores = jnp.sum((t * q_ref[...]).astype(jnp.float32), axis=-1)  # (TB,S)

        # softmax over the sequence axis (dim=1 in the PyTorch module),
        # normalization deferred to the pooled (TB,H) result.
        m = jnp.max(scores, axis=-1, keepdims=True)
        e = jnp.exp(scores - m)                               # (TB,S) f32
        denom = jnp.sum(e, axis=-1, keepdims=True)            # (TB,1) f32

        # Unnormalized weighted sum over the sequence: compute-dtype broadcast
        # multiply, f32 sublane-reduce accumulation.
        acc = jnp.sum((hs * e.astype(hs.dtype)[:, :, None]).astype(jnp.float32),
                      axis=1)                                 # (TB,H) f32
        inv = pl.reciprocal(denom, approx=False)              # exact 1/denom, tiny
        out_ref[...] = (acc * inv).astype(out_ref.dtype)
    return attn_pool_kernel


# --------------------------------------------------------------------------- #
# Wrapper helpers
# --------------------------------------------------------------------------- #
def _vmem_capacity_bytes():
    try:
        return int(pltpu.get_tpu_info().vmem_capacity_bytes)
    except Exception:
        return 64 << 20   # conservative default (v7x per-TensorCore)


def _pick_block_b(batch, row_bytes, target_bytes, sublane):
    """Pick a batch block: divides B, multiple of the sublane tile, near the
    target byte size, and preferring >=2 grid steps so the pipeline overlaps
    and the 'parallel' axis can split across TensorCores (v7x)."""
    want = max(1, target_bytes // max(1, row_bytes))

    # Prefer splitting B into at least 2 blocks when that keeps legal tiling.
    cap = min(want, batch // 2) if batch >= 2 * sublane else 0
    bb = (cap // sublane) * sublane
    while bb >= sublane:
        if batch % bb == 0:
            return bb
        bb -= sublane

    # Couldn't split cleanly (tiny batch): single full-batch block or the
    # largest divisor that fits the target.
    if want >= batch:
        return batch
    bb = (min(want, batch) // sublane) * sublane
    while bb >= sublane:
        if batch % bb == 0:
            return bb
        bb -= sublane
    return batch


def _build_call(B, S, H, block_b, out_dtype, vmem_limit, mxu_precision,
                single_buffer):
    kernel = _make_kernel(mxu_precision)

    def rep(shape):                      # replicated (untiled) small operand
        nd = len(shape)
        idx = lambda i, _nd=nd: (0,) * _nd
        if single_buffer:
            # Block index never changes -> single buffer, saves VMEM.
            return pl.BlockSpec(shape, idx, pipeline_mode=pl.Buffered(1))
        return pl.BlockSpec(shape, idx)

    return pl.pallas_call(
        kernel,
        out_shape=jax.ShapeDtypeStruct((B, H), out_dtype),
        grid_spec=pltpu.PrefetchScalarGridSpec(
            num_scalar_prefetch=0,
            grid=(B // block_b,),
            in_specs=[
                pl.BlockSpec((block_b, S, H), lambda i: (i, 0, 0)),  # hidden
                rep((H, H)),                                          # W^T
                rep((1, H)),                                          # bias
                rep((1, H)),                                          # query
            ],
            out_specs=pl.BlockSpec((block_b, H), lambda i: (i, 0)),
        ),
        compiler_params=pltpu.CompilerParams(
            dimension_semantics=("parallel",),
            vmem_limit_bytes=vmem_limit),
    )


# --------------------------------------------------------------------------- #
# Public entry point
# --------------------------------------------------------------------------- #
def attention_pooling(hidden_states, params, *, compute_dtype=jnp.bfloat16,
                      block_b=None):
    """hidden_states: (B, S, H); params = (key_w (H,H), key_b (H,), query (H,)).

    compute_dtype: dtype of the HBM-resident operands and big elementwise work
    (default bf16 — the kernel is HBM-bound for typical H). Reductions,
    softmax and the final accumulation are always f32; output keeps the input
    dtype. Pass jnp.float32 for exact module-precision results.
    """
    B, S, H = hidden_states.shape
    key_w, key_b, query = params
    out_dtype = hidden_states.dtype
    cd = jnp.dtype(compute_dtype)

    # TODO(synk): for real workloads pad H to a multiple of 128 in the caller;
    # the kernel is correct for any H (blocks span the full H) but lane/MXU
    # utilization and store efficiency are best when H % 128 == 0.

    hs_c = hidden_states.astype(cd)
    wt_c = key_w.T.astype(cd)            # kernel computes x @ W^T as x @ wt
    b2 = key_b.astype(cd).reshape(1, H)
    q2 = query.astype(cd).reshape(1, H)

    vmem_cap = _vmem_capacity_bytes()
    small_vmem = vmem_cap <= (64 << 20)          # v7x: 64 MiB per TensorCore

    if block_b is None:
        target = (3 << 20) if small_vmem else (6 << 20)
        sublane = 16 if min(cd.itemsize, jnp.dtype(out_dtype).itemsize) == 2 else 8
        block_b = _pick_block_b(B, S * H * cd.itemsize, target, sublane)
    assert B % block_b == 0, (B, block_b)

    # VMEM budget: double-buffered hidden + output blocks, replicated operands
    # (counted double-buffered as an upper bound in case the single-buffer
    # request is ignored), f32 intermediates (z / tanh / upcast products), and
    # headroom for Mosaic internal scratch.
    in_block = block_b * S * H * cd.itemsize
    out_block = block_b * H * jnp.dtype(out_dtype).itemsize
    w_bytes = (H * H + 2 * H) * cd.itemsize
    tmp_f32 = int(2.5 * block_b * S * H * 4) + 16 * block_b * S
    need = 2 * in_block + 2 * out_block + 2 * w_bytes + tmp_f32 + (2 << 20)
    hard_cap = (40 << 20) if small_vmem else (64 << 20)
    vmem_limit = int(min(hard_cap, max(8 << 20, need)))

    mxu_precision = (jax.lax.Precision.HIGHEST
                     if cd == jnp.dtype(jnp.float32) else None)

    args = (hs_c, wt_c, b2, q2)
    try:
        return _build_call(B, S, H, block_b, out_dtype, vmem_limit,
                           mxu_precision, single_buffer=True)(*args)
    except Exception:
        # Fallback if this JAX build rejects pl.Buffered(1) on a pallas_call
        # BlockSpec; only costs one extra replicated-operand buffer of VMEM.
        return _build_call(B, S, H, block_b, out_dtype, vmem_limit,
                           mxu_precision, single_buffer=False)(*args)


# --------------------------------------------------------------------------- #
# Params + reference
# --------------------------------------------------------------------------- #
def init_params(key, hidden_dim):
    """Mirror the PyTorch module: query ~ N(0,1); nn.Linear default-style init."""
    kq, kw, kb = jax.random.split(key, 3)
    bound = 1.0 / math.sqrt(hidden_dim)
    query = jax.random.normal(kq, (hidden_dim,), jnp.float32)
    key_w = jax.random.uniform(kw, (hidden_dim, hidden_dim), jnp.float32,
                               -bound, bound)
    key_b = jax.random.uniform(kb, (hidden_dim,), jnp.float32, -bound, bound)
    return key_w, key_b, query


def attention_pooling_ref(hidden_states, params, compute_dtype=None):
    """Pure-JAX reference. With compute_dtype=None it matches the PyTorch
    forward in f32; with a dtype it mirrors the kernel's mixed-precision
    recipe (quantization-matched check for the bf16 path)."""
    key_w, key_b, query = params
    cd = (jnp.dtype(hidden_states.dtype) if compute_dtype is None
          else jnp.dtype(compute_dtype))
    hs = hidden_states.astype(cd)
    wt = key_w.T.astype(cd)
    b = key_b.astype(cd)
    q = query.astype(cd)

    z = jnp.matmul(hs, wt, preferred_element_type=jnp.float32,
                   precision=jax.lax.Precision.HIGHEST) + b.astype(jnp.float32)
    t = jnp.tanh(z).astype(cd)                                    # (B,S,H)
    scores = jnp.sum((t * q).astype(jnp.float32), axis=-1)        # (B,S)
    m = jnp.max(scores, axis=-1, keepdims=True)
    e = jnp.exp(scores - m)
    denom = jnp.sum(e, axis=-1, keepdims=True)
    acc = jnp.sum((hs * e.astype(cd)[:, :, None]).astype(jnp.float32), axis=1)
    return (acc / denom).astype(hidden_states.dtype)


# --------------------------------------------------------------------------- #
# Sanity check
# --------------------------------------------------------------------------- #
if __name__ == "__main__":
    key = jax.random.PRNGKey(0)
    k_hs, k_p, k_hs2 = jax.random.split(key, 3)

    B, S, H = 2, 8, 32
    hidden_states = jax.random.normal(k_hs, (B, S, H), jnp.float32)
    params = init_params(k_p, H)

    # 1) default bf16 data path vs a quantization-matched reference.
    out_bf16 = jax.block_until_ready(attention_pooling(hidden_states, params))
    ref_bf16 = attention_pooling_ref(hidden_states, params,
                                     compute_dtype=jnp.bfloat16)
    assert out_bf16.shape == (B, H), out_bf16.shape
    assert out_bf16.dtype == hidden_states.dtype, out_bf16.dtype
    err_bf16 = float(jnp.max(jnp.abs(out_bf16 - ref_bf16)))
    assert jnp.allclose(out_bf16, ref_bf16, atol=1e-2, rtol=1e-2), err_bf16

    # 2) f32 path: exact module semantics, tight tolerance.
    out_f32 = jax.block_until_ready(
        attention_pooling(hidden_states, params, compute_dtype=jnp.float32))
    ref_f32 = attention_pooling_ref(hidden_states, params)
    err_f32 = float(jnp.max(jnp.abs(out_f32 - ref_f32)))
    assert jnp.allclose(out_f32, ref_f32, atol=1e-4, rtol=1e-4), err_f32

    # 3) larger batch: exercises the multi-block grid (>=2 steps) path.
    B2 = 32
    hs2 = jax.random.normal(k_hs2, (B2, S, H), jnp.float32)
    out2 = jax.block_until_ready(attention_pooling(hs2, params))
    ref2 = attention_pooling_ref(hs2, params, compute_dtype=jnp.bfloat16)
    assert out2.shape == (B2, H), out2.shape
    err2 = float(jnp.max(jnp.abs(out2 - ref2)))
    assert jnp.allclose(out2, ref2, atol=1e-2, rtol=1e-2), err2

    print("KERNEL_OK")
</pallas_src>

<mosaic_0001>
module attributes {stable_mosaic.version = 11 : i64} {
  func.func @attn_pool_kernel(%arg0: i32, %arg1: memref<2x8x32xbf16, #tpu.memory_space<vmem>>, %arg2: memref<32x32xbf16, #tpu.memory_space<vmem>>, %arg3: memref<1x32xbf16, #tpu.memory_space<vmem>>, %arg4: memref<1x32xbf16, #tpu.memory_space<vmem>>, %arg5: memref<2x32xf32, #tpu.memory_space<vmem>>) attributes {dimension_semantics = [#tpu.dimension_semantics<parallel>], iteration_bounds = array<i64: 1>, scalar_prefetch = 0 : i64, scratch_operands = 0 : i64, tpu.core_type = #tpu.core_type<tc>, window_params = [{transform_indices = @transform_0, window_bounds = array<i64: 2, 8, 32>}, {pipeline_mode = #tpu.pipeline_mode<synchronous>, transform_indices = @transform_1, window_bounds = array<i64: 32, 32>}, {pipeline_mode = #tpu.pipeline_mode<synchronous>, transform_indices = @transform_2, window_bounds = array<i64: 1, 32>}, {pipeline_mode = #tpu.pipeline_mode<synchronous>, transform_indices = @transform_3, window_bounds = array<i64: 1, 32>}, {transform_indices = @transform_4, window_bounds = array<i64: 2, 32>}]} {
    %c0 = arith.constant 0 : index
    %c0_0 = arith.constant 0 : index
    %c0_1 = arith.constant 0 : index
    %0 = vector.load %arg1[%c0, %c0_0, %c0_1] : memref<2x8x32xbf16, #tpu.memory_space<vmem>>, vector<2x8x32xbf16>
    %1 = vector.shape_cast %0 : vector<2x8x32xbf16> to vector<16x32xbf16>
    %c0_2 = arith.constant 0 : index
    %c0_3 = arith.constant 0 : index
    %2 = vector.load %arg2[%c0_2, %c0_3] : memref<32x32xbf16, #tpu.memory_space<vmem>>, vector<32x32xbf16>
    %cst = arith.constant dense<0.000000e+00> : vector<16x32xf32>
    %3 = tpu.matmul %1, %2, %cst {dimension_numbers = #tpu.dot_dimension_numbers<[1], [0], [0], [1], [0, 0, 1, 1], [], []>} : vector<16x32xbf16>, vector<32x32xbf16>, vector<16x32xf32> -> vector<16x32xf32>
    %c0_4 = arith.constant 0 : index
    %c0_5 = arith.constant 0 : index
    %4 = vector.load %arg3[%c0_4, %c0_5] : memref<1x32xbf16, #tpu.memory_space<vmem>>, vector<1x32xbf16>
    %5 = arith.extf %4 : vector<1x32xbf16> to vector<1x32xf32>
    %6 = vector.broadcast %5 : vector<1x32xf32> to vector<16x32xf32>
    %7 = arith.addf %3, %6 : vector<16x32xf32>
    %8 = math.tanh %7 : vector<16x32xf32>
    %9 = arith.truncf %8 : vector<16x32xf32> to vector<16x32xbf16>
    %10 = vector.shape_cast %9 : vector<16x32xbf16> to vector<2x8x32xbf16>
    %c0_6 = arith.constant 0 : index
    %c0_7 = arith.constant 0 : index
    %11 = vector.load %arg4[%c0_6, %c0_7] : memref<1x32xbf16, #tpu.memory_space<vmem>>, vector<1x32xbf16>
    %12 = vector.shape_cast %11 : vector<1x32xbf16> to vector<1x1x32xbf16>
    %13 = vector.broadcast %12 : vector<1x1x32xbf16> to vector<2x8x32xbf16>
    %14 = arith.mulf %10, %13 : vector<2x8x32xbf16>
    %15 = arith.extf %14 : vector<2x8x32xbf16> to vector<2x8x32xf32>
    %cst_8 = arith.constant dense<0.000000e+00> : vector<2x8xf32>
    %16 = vector.multi_reduction <add>, %15, %cst_8 [2] : vector<2x8x32xf32> to vector<2x8xf32>
    %cst_9 = arith.constant dense<0xFF800000> : vector<2xf32>
    %17 = vector.multi_reduction <maximumf>, %16, %cst_9 [1] : vector<2x8xf32> to vector<2xf32>
    %18 = vector.shape_cast %17 : vector<2xf32> to vector<2x1xf32>
    %19 = vector.broadcast %18 : vector<2x1xf32> to vector<2x8xf32>
    %20 = arith.subf %16, %19 : vector<2x8xf32>
    %21 = math.exp %20 : vector<2x8xf32>
    %cst_10 = arith.constant dense<0.000000e+00> : vector<2xf32>
    %22 = vector.multi_reduction <add>, %21, %cst_10 [1] : vector<2x8xf32> to vector<2xf32>
    %23 = vector.shape_cast %22 : vector<2xf32> to vector<2x1xf32>
    %24 = arith.truncf %21 : vector<2x8xf32> to vector<2x8xbf16>
    %25 = vector.shape_cast %24 : vector<2x8xbf16> to vector<2x8x1xbf16>
    %26 = vector.broadcast %25 : vector<2x8x1xbf16> to vector<2x8x32xbf16>
    %27 = arith.mulf %0, %26 : vector<2x8x32xbf16>
    %28 = arith.extf %27 : vector<2x8x32xbf16> to vector<2x8x32xf32>
    %cst_11 = arith.constant dense<0.000000e+00> : vector<2x32xf32>
    %29 = vector.multi_reduction <add>, %28, %cst_11 [1] : vector<2x8x32xf32> to vector<2x32xf32>
    %30 = tpu.reciprocal %23 : vector<2x1xf32> -> vector<2x1xf32>
    %31 = vector.broadcast %30 : vector<2x1xf32> to vector<2x32xf32>
    %32 = arith.mulf %29, %31 : vector<2x32xf32>
    %c0_12 = arith.constant 0 : index
    %c0_13 = arith.constant 0 : index
    %33 = vector.load %arg5[%c0_12, %c0_13] : memref<2x32xf32, #tpu.memory_space<vmem>>, vector<2x32xf32>
    tpu.vector_store %arg5[%c0_12, %c0_13], %32 {strides = array<i32>} : memref<2x32xf32, #tpu.memory_space<vmem>>, vector<2x32xf32>,
    return
  }
  func.func @transform_0(%arg0: i32) -> (i32, i32, i32) {
    %c0_i32 = arith.constant 0 : i32
    %c0_i32_0 = arith.constant 0 : i32
    %c0_i32_1 = arith.constant 0 : i32
    return %arg0, %c0_i32, %c0_i32_0 : i32, i32, i32
  }
  func.func @transform_1(%arg0: i32) -> (i32, i32) {
    %c0_i32 = arith.constant 0 : i32
    %c0_i32_0 = arith.constant 0 : i32
    %c0_i32_1 = arith.constant 0 : i32
    return %c0_i32, %c0_i32_0 : i32, i32
  }
  func.func @transform_2(%arg0: i32) -> (i32, i32) {
    %c0_i32 = arith.constant 0 : i32
    %c0_i32_0 = arith.constant 0 : i32
    %c0_i32_1 = arith.constant 0 : i32
    return %c0_i32, %c0_i32_0 : i32, i32
  }
  func.func @transform_3(%arg0: i32) -> (i32, i32) {
    %c0_i32 = arith.constant 0 : i32
    %c0_i32_0 = arith.constant 0 : i32
    %c0_i32_1 = arith.constant 0 : i32
    return %c0_i32, %c0_i32_0 : i32, i32
  }
  func.func @transform_4(%arg0: i32) -> (i32, i32) {
    %c0_i32 = arith.constant 0 : i32
    %c0_i32_0 = arith.constant 0 : i32
    return %arg0, %c0_i32 : i32, i32
  }
}

module attributes {stable_mosaic.version = 11 : i64} {
  func.func @attn_pool_kernel(%arg0: i32, %arg1: memref<2x8x32xbf16, #tpu.memory_space<vmem>>, %arg2: memref<32x32xbf16, #tpu.memory_space<vmem>>, %arg3: memref<1x32xbf16, #tpu.memory_space<vmem>>, %arg4: memref<1x32xbf16, #tpu.memory_space<vmem>>, %arg5: memref<2x32xf32, #tpu.memory_space<vmem>>) attributes {dimension_semantics = [#tpu.dimension_semantics<parallel>], iteration_bounds = array<i64: 1>, scalar_prefetch = 0 : i64, scratch_operands = 0 : i64, tpu.core_type = #tpu.core_type<tc>, window_params = [{transform_indices = @transform_0, window_bounds = array<i64: 2, 8, 32>}, {pipeline_mode = #tpu.pipeline_mode<synchronous>, transform_indices = @transform_1, window_bounds = array<i64: 32, 32>}, {pipeline_mode = #tpu.pipeline_mode<synchronous>, transform_indices = @transform_2, window_bounds = array<i64: 1, 32>}, {pipeline_mode = #tpu.pipeline_mode<synchronous>, transform_indices = @transform_3, window_bounds = array<i64: 1, 32>}, {transform_indices = @transform_4, window_bounds = array<i64: 2, 32>}]} {
    %c0 = arith.constant 0 : index
    %c0_0 = arith.constant 0 : index
    %c0_1 = arith.constant 0 : index
    %0 = vector.load %arg1[%c0, %c0_0, %c0_1] : memref<2x8x32xbf16, #tpu.memory_space<vmem>>, vector<2x8x32xbf16>
    %1 = vector.shape_cast %0 : vector<2x8x32xbf16> to vector<16x32xbf16>
    %c0_2 = arith.constant 0 : index
    %c0_3 = arith.constant 0 : index
    %2 = vector.load %arg2[%c0_2, %c0_3] : memref<32x32xbf16, #tpu.memory_space<vmem>>, vector<32x32xbf16>
    %cst = arith.constant dense<0.000000e+00> : vector<16x32xf32>
    %3 = tpu.matmul %1, %2, %cst {dimension_numbers = #tpu.dot_dimension_numbers<[1], [0], [0], [1], [0, 0, 1, 1], [], []>} : vector<16x32xbf16>, vector<32x32xbf16>, vector<16x32xf32> -> vector<16x32xf32>
    %c0_4 = arith.constant 0 : index
    %c0_5 = arith.constant 0 : index
    %4 = vector.load %arg3[%c0_4, %c0_5] : memref<1x32xbf16, #tpu.memory_space<vmem>>, vector<1x32xbf16>
    %5 = arith.extf %4 : vector<1x32xbf16> to vector<1x32xf32>
    %6 = vector.broadcast %5 : vector<1x32xf32> to vector<16x32xf32>
    %7 = arith.addf %3, %6 : vector<16x32xf32>
    %8 = math.tanh %7 : vector<16x32xf32>
    %9 = arith.truncf %8 : vector<16x32xf32> to vector<16x32xbf16>
    %10 = vector.shape_cast %9 : vector<16x32xbf16> to vector<2x8x32xbf16>
    %c0_6 = arith.constant 0 : index
    %c0_7 = arith.constant 0 : index
    %11 = vector.load %arg4[%c0_6, %c0_7] : memref<1x32xbf16, #tpu.memory_space<vmem>>, vector<1x32xbf16>
    %12 = vector.shape_cast %11 : vector<1x32xbf16> to vector<1x1x32xbf16>
    %13 = vector.broadcast %12 : vector<1x1x32xbf16> to vector<2x8x32xbf16>
    %14 = arith.mulf %10, %13 : vector<2x8x32xbf16>
    %15 = arith.extf %14 : vector<2x8x32xbf16> to vector<2x8x32xf32>
    %cst_8 = arith.constant dense<0.000000e+00> : vector<2x8xf32>
    %16 = vector.multi_reduction <add>, %15, %cst_8 [2] : vector<2x8x32xf32> to vector<2x8xf32>
    %cst_9 = arith.constant dense<0xFF800000> : vector<2xf32>
    %17 = vector.multi_reduction <maximumf>, %16, %cst_9 [1] : vector<2x8xf32> to vector<2xf32>
    %18 = vector.shape_cast %17 : vector<2xf32> to vector<2x1xf32>
    %19 = vector.broadcast %18 : vector<2x1xf32> to vector<2x8xf32>
    %20 = arith.subf %16, %19 : vector<2x8xf32>
    %21 = math.exp %20 : vector<2x8xf32>
    %cst_10 = arith.constant dense<0.000000e+00> : vector<2xf32>
    %22 = vector.multi_reduction <add>, %21, %cst_10 [1] : vector<2x8xf32> to vector<2xf32>
    %23 = vector.shape_cast %22 : vector<2xf32> to vector<2x1xf32>
    %24 = arith.truncf %21 : vector<2x8xf32> to vector<2x8xbf16>
    %25 = vector.shape_cast %24 : vector<2x8xbf16> to vector<2x8x1xbf16>
    %26 = vector.broadcast %25 : vector<2x8x1xbf16> to vector<2x8x32xbf16>
    %27 = arith.mulf %0, %26 : vector<2x8x32xbf16>
    %28 = arith.extf %27 : vector<2x8x32xbf16> to vector<2x8x32xf32>
    %cst_11 = arith.constant dense<0.000000e+00> : vector<2x32xf32>
    %29 = vector.multi_reduction <add>, %28, %cst_11 [1] : vector<2x8x32xf32> to vector<2x32xf32>
    %30 = tpu.reciprocal %23 : vector<2x1xf32> -> vector<2x1xf32>
    %31 = vector.broadcast %30 : vector<2x1xf32> to vector<2x32xf32>
    %32 = arith.mulf %29, %31 : vector<2x32xf32>
    %c0_12 = arith.constant 0 : index
    %c0_13 = arith.constant 0 : index
    %33 = vector.load %arg5[%c0_12, %c0_13] : memref<2x32xf32, #tpu.memory_space<vmem>>, vector<2x32xf32>
    tpu.vector_store %arg5[%c0_12, %c0_13], %32 {strides = array<i32>} : memref<2x32xf32, #tpu.memory_space<vmem>>, vector<2x32xf32>,
    return
  }
  func.func @transform_0(%arg0: i32) -> (i32, i32, i32) {
    %c0_i32 = arith.constant 0 : i32
    %c0_i32_0 = arith.constant 0 : i32
    %c0_i32_1 = arith.constant 0 : i32
    return %arg0, %c0_i32, %c0_i32_0 : i32, i32, i32
  }
  func.func @transform_1(%arg0: i32) -> (i32, i32) {
    %c0_i32 = arith.constant 0 : i32
    %c0_i32_0 = arith.constant 0 : i32
    %c0_i32_1 = arith.constant 0 : i32
    return %c0_i32, %c0_i32_0 : i32, i32
  }
  func.func @transform_2(%arg0: i32) -> (i32, i32) {
    %c0_i32 = arith.constant 0 : i32
    %c0_i32_0 = arith.constant 0 : i32
    %c0_i32_1 = arith.constant 0 : i32
    return %c0_i32, %c0_i32_0 : i32, i32
  }
  func.func @transform_3(%arg0: i32) -> (i32, i32) {
    %c0_i32 = arith.constant 0 : i32
    %c0_i32_0 = arith.constant 0 : i32
    %c0_i32_1 = arith.constant 0 : i32
    return %c0_i32, %c0_i32_0 : i32, i32
  }
  func.func @transform_4(%arg0: i32) -> (i32, i32) {
    %c0_i32 = arith.constant 0 : i32
    %c0_i32_0 = arith.constant 0 : i32
    return %arg0, %c0_i32 : i32, i32
  }
}

</mosaic_0001>

<bundles_post_ra>
// kernel: tpu_custom_call.1
= control target key start
LH: loop header
LB: loop body
LE: loop exit
PB: predicated region body
PF: predicated region fallthrough
CT: control target
= control target key end

     0   :  { %9 = vsyncpa [#allocation3], 0  ;;  %s473_s0 = inlined_call_operand.hbm [shape: bf16[2,8,32], index: 0, kind: input, shape index: {}]   ;;  %s474_s1 = inlined_call_operand.hbm [shape: bf16[32,32], index: 1, kind: input, shape index: {}]   ;;  %s475_s2 = inlined_call_operand.vmem [shape: bf16[1,32], index: 2, kind: input, shape index: {}]   ;;  %s476_s3 = inlined_call_operand.vmem [shape: bf16[1,32], index: 3, kind: input, shape index: {}]   ;;  %s477_s4 = inlined_call_operand.hbm [shape: f32[2,32], index: 4, kind: output, shape index: {}]  }
   0x1   :  { %10 = vsyncpa [#allocation6], 0 }
   0x2   :  { %11 = vsyncpa [#allocation4], 0  ;;  %s380_s15 = smov [#allocation2]   ;;  %s308_s19 = scalar_lea.hbm %s473_s0, 128 }
   0x3   :  { %s17_s16 = sshll.u32 %s380_s15, 4  ;;  %p309_p0 = scmp.ne.s32.totalorder %s473_s0, %s308_s19  ;;  %s18_s16 = int_to_ptr.vmem [resolvable:$true] %s17_s16 }
   0x4   :  { %p312_p1 = scmp.lt.u32.totalorder %s308_s19, %s473_s0 }
   0x6   :  { %p314_p2 = pnand %p312_p1, %p309_p0 }
   0x8   :  { %317 = shalt.err (!%p314_p2)
}
   0x9   :  { %s318_s24 = scalar_lea.vmem %s18_s16, 128  ;;  %p323_p4 = scmp.lt.s32.totalorder %s18_s16, %s18_s16 }
   0xa   :  { %p319_p3 = scmp.ne.s32.totalorder %s18_s16, %s318_s24  ;;  %p324_p5 = scmp.lt.s32.totalorder %s318_s24, %s318_s24 }
   0xc   :  { %p325_p6 = por %p324_p5, %p323_p4 }
   0xe   :  { %p326_p7 = pnand %p325_p6, %p319_p3 }
  0x10   :  { %329 = shalt.err (!%p326_p7)
}
  0x11   :  { %s381_s25 = smov 64   ;;  %s382_s26 = smov 4  }
  0x12   :  { %23 = dma.hbm_to_vmem [thread:$0]  %s473_s0, 128, %s18_s16, [#allocation3], %s381_s25, %s381_s25, %s382_s26  }
  0x13   :  { %s383_s29 = smov [#allocation5]   ;;  %s330_s7 = scalar_lea.hbm %s474_s1, 256 }
  0x14   :  { %s29_s30 = sshll.u32 %s383_s29, 4  ;;  %p331_p8 = scmp.ne.s32.totalorder %s474_s1, %s330_s7  ;;  %s30_s30 = int_to_ptr.vmem [resolvable:$true] %s29_s30 }
  0x15   :  { %p334_p9 = scmp.lt.u32.totalorder %s330_s7, %s474_s1 }
  0x17   :  { %p336_p10 = pnand %p334_p9, %p331_p8 }
  0x19   :  { %339 = shalt.err (!%p336_p10)
}
  0x1a   :  { %s340_s12 = scalar_lea.vmem %s30_s30, 256  ;;  %p345_p12 = scmp.lt.s32.totalorder %s30_s30, %s30_s30 }
  0x1b   :  { %p341_p11 = scmp.ne.s32.totalorder %s30_s30, %s340_s12  ;;  %p346_p13 = scmp.lt.s32.totalorder %s340_s12, %s340_s12 }
  0x1d   :  { %p347_p0 = por %p346_p13, %p345_p12 }
  0x1f   :  { %p348_p1 = pnand %p347_p0, %p341_p11 }
  0x21   :  { %351 = shalt.err (!%p348_p1)
}
  0x22   :  { %35 = dma.hbm_to_vmem [thread:$0]  %s474_s1, 256, %s30_s30, [#allocation6], %s381_s25, %s381_s25, %s382_s26  }
  0x23   :  { %374 = dma.done.wait [#allocation3], 128  }
  0x24   :  { %375 = vsyncadd [#allocation3], 4294967168 }
  0x25   :  { %376 = dma.done.wait [#allocation6], 256  }
  0x26   :  { %377 = vsyncadd [#allocation6], 4294967040  ;;  %v384_v0 = vmov 0.0   ;;  %vm385_vm0 = vmmov 0   ;;  %v295_v1 = vld [vmem:[#allocation5] sm:$0xff]   ;;  %v296_v2 = vld [vmem:[#allocation5 + $0x8] sm:$0xff]   ;;  %v55_v6 = vlaneseq }
  0x27   :  { %277 = vmatprep.subr.bf16.mxu0 %v384_v0  ;;  %281 = vmatprep.mubr.msk.bf16.mxu0 %vm385_vm0, %v384_v0  ;;  %v437_v3 = vld [vmem:[#allocation2] sm:$0xf]  ;;  %v439_v4 = vld [vmem:[#allocation2 + $0x4] sm:$0xf]  ;;  %vm76_vm1 = vcmask 261120   ;;  %vm161_vm2 = vcmask 1041409  }
  0x28   :  { %278 = vmatpush3.bf16.msra.mxu0 %v295_v1  ;;  %v266_v5 = vcombine.low %v437_v3, %v439_v4  ;;  %v56_v7 = vshrl.u32 %v55_v6, 7  ;;  %v53_v8 = vld [vmem:[%s475_s2] sm:$0x1]  ;;  %v152_v31 = vand.u32 127, %v55_v6  ;;  %vm164_vm3 = vcmask 58368   ;;  %s387_s2 = smov [#allocation7]  }
  0x29   :  { %279 = vmatprep.subr.bf16.mxu0 %v384_v0  ;;  %v54_v9 = vunpack.c.l.bf16 %v53_v8  ;;  %v131_v18 = vld [vmem:[%s476_s3] sm:$0x1]  ;;  %v386_v39 = vmov 0   ;;  %s256_s3 = sshll.u32 %s387_s2, 4  ;;  %vm248_vm4 = vcmask 254976   ;;  %s257_s3 = int_to_ptr.vmem [resolvable:$true] %s256_s3 }
  0x2a   :  { %v57_v10 = vsub.s32 0, %v56_v7  ;;  %v133_v19 = vpack.i.b16 %v131_v18, %v131_v18  ;;  %v155_v33 = vsub.s32 %v152_v31, %v56_v7  ;;  %294 = vset.pattern.permute.xlu0 %v386_v39  ;;  %293 = vset.pattern.permute.xlu1 %v386_v39  ;;  %v175_v40 = vsub.s32 1, %v56_v7  ;;  %s352_s17 = scalar_lea.vmem %s257_s3, 32  ;;  %p357_p3 = scmp.lt.s32.totalorder %s257_s3, %s257_s3 }
  0x2b   :  { %p353_p2 = scmp.ne.s32.totalorder %s257_s3, %s352_s17  ;;  %p358_p4 = scmp.lt.s32.totalorder %s352_s17, %s352_s17 }
  0x2c   :  { %280 = vmatpush3.bf16.msra.mxu0 %v296_v2  ;;  %v58_v11 = vrot.slane %v54_v9, %v57_v10  ;;  %v138_v20 = vrot.slane %v133_v19, %v57_v10 }
  0x2d   :  { %p359_p5 = por %p358_p4, %p357_p3 }
  0x2f   :  { %282 = vmatmul.mubr.msk.bf16.vlgmr.msra.gmra.mrb[0].mxu0 %vm76_vm1, %v266_v5  ;;  %p360_p6 = pnand %p359_p5, %p353_p2 }
 0x102   :  { %v114_v12 = vpop.f32.mrb[0].mxu0 }
 0x103   :  { %v115_v13 = vadd.f32 %v114_v12, %v58_v11  ;;  %v283_v14 = vpop.f32.mrb[1].mxu0 }
 0x104   :  { %v117_v15 = vpop.f32.mrb[2].mxu0 }
 0x105   :  { %298 = vtanh.f32 %v115_v13  ;;  %v118_v16 = vadd.f32 %v117_v15, %v58_v11  ;;  %v284_v17 = vpop.f32.mrb[3].mxu0 }
 0x107   :  { %300 = vtanh.f32 %v118_v16 }
 0x10f   :  { %v299_v21 = vpop.eup %298 }
 0x110   :  { %v272_v22 = vpack.c.bf16 %v299_v21, %v299_v21 }
 0x111   :  { %v301_v23 = vpop.eup %300 }
 0x112   :  { %v273_v24 = vpack.c.bf16 %v301_v23, %v301_v23  ;;  %v139_v25 = vmul.bf16 %v272_v22, %v138_v20 }
 0x114   :  { %v141_v26 = vunpack.c.l.bf16 %v139_v25  ;;  %v140_v27 = vmul.bf16 %v273_v24, %v138_v20 }
 0x116   :  { %v143_v28 = vsel %vm76_vm1, %v141_v26, 0.0  ;;  %v142_v29 = vunpack.c.l.bf16 %v140_v27 }
 0x117   :  { %144 = vadd.xlane.f32.xlu0 %v143_v28 }
 0x118   :  { %v146_v30 = vsel %vm76_vm1, %v142_v29, 0.0 }
 0x11b   :  { %147 = vadd.xlane.f32.xlu0 %v146_v30 }
 0x1a4   :  { %v145_v32 = vpop.xlane.xlu0 %144 }
 0x1a5   :  { %v156_v35 = vrot.slane %v145_v32, %v155_v33 }
 0x1a8   :  { %v148_v34 = vpop.xlane.xlu0 %147 }
 0x1a9   :  { %v160_v36 = vrot.slane %v148_v34, %v155_v33 }
 0x1ab   :  { %v162_v37 = vsel %vm161_vm2, %v160_v36, %v156_v35 }
 0x1ac   :  { %v165_v38 = vsel %vm164_vm3, %v162_v37, -inf }
 0x1ad   :  { %166 = vmax.xlane.f32.xlu1 %v165_v38 }
 0x23a   :  { %v167_v41 = vpop.xlane.xlu1 %166 }
 0x23b   :  { %v172_v42 = vrot.slane %v167_v41, %v57_v10  ;;  %v176_v43 = vrot.slane %v167_v41, %v175_v40 }
 0x23d   :  { %v179_v44 = vsub.f32 %v145_v32, %v172_v42  ;;  %v180_v45 = vsub.f32 %v148_v34, %v176_v43 }
 0x23f   :  { %v181_v46 = vmul.f32 1.442695, %v179_v44  ;;  %v183_v47 = vmul.f32 1.442695, %v180_v45 }
 0x241   :  { %302 = vpow2.f32 %v181_v46 }
 0x242   :  { %304 = vpow2.f32 %v183_v47 }
 0x24b   :  { %v303_v48 = vpop.eup %302 }
 0x24c   :  { %v305_v49 = vpop.eup %304  ;;  %188 = vperm.xlu1 %293, %v303_v48   ;;  %v206_v51 = vpack.c.bf16 %v303_v48, %v303_v48 }
 0x24d   :  { %191 = vperm.xlu0 %294, %v305_v49   ;;  %v207_v50 = vpack.c.bf16 %v305_v49, %v305_v49 }
 0x251   :  { %215 = vperm.xlu0 %294, %v207_v50  }
 0x255   :  { %210 = vperm.xlu0 %294, %v206_v51  }
 0x2cb   :  { %v189_v52 = vpop.permute.xlu1 %188 }
 0x2cc   :  { %v192_v53 = vpop.permute.xlu0 %191  ;;  %v196_v54 = vrot.slane %v189_v52, %v155_v33 }
 0x2cd   :  { %v200_v55 = vrot.slane %v192_v53, %v155_v33 }
 0x2cf   :  { %v201_v56 = vsel %vm161_vm2, %v200_v55, %v196_v54 }
 0x2d0   :  { %v203_v57 = vsel %vm164_vm3, %v201_v56, 0.0  ;;  %v216_v58 = vpop.permute.xlu0 %215 }
 0x2d1   :  { %204 = vadd.xlane.f32.xlu1 %v203_v57  ;;  %v219_v60 = vmul.bf16 %v216_v58, %v439_v4 }
 0x2d3   :  { %v221_v62 = vunpack.c.l.bf16 %v219_v60 }
 0x2d4   :  { %v211_v59 = vpop.permute.xlu0 %210 }
 0x2d5   :  { %v218_v61 = vmul.bf16 %v211_v59, %v437_v3  ;;  %v229_v0 = vsel %vm76_vm1, %v221_v62, 0.0 }
 0x2d6   :  { %v230_v2 = vrot.slane %v229_v0, 4 }
 0x2d7   :  { %v220_v63 = vunpack.c.l.bf16 %v218_v61 }
 0x2d8   :  { %v231_v6 = vadd.f32 %v230_v2, %v229_v0 }
 0x2d9   :  { %v222_v1 = vsel %vm76_vm1, %v220_v63, 0.0 }
 0x2da   :  { %v223_v5 = vrot.slane %v222_v1, 4  ;;  %v232_v8 = vrot.slane %v231_v6, 2 }
 0x2dc   :  { %v224_v7 = vadd.f32 %v223_v5, %v222_v1  ;;  %v233_v11 = vadd.f32 %v232_v8, %v231_v6 }
 0x2de   :  { %v225_v10 = vrot.slane %v224_v7, 2  ;;  %v234_v13 = vrot.slane %v233_v11, 1 }
 0x2e0   :  { %v226_v12 = vadd.f32 %v225_v10, %v224_v7  ;;  %v235_v3 = vadd.f32 %v234_v13, %v233_v11 }
 0x2e2   :  { %v227_v4 = vrot.slane %v226_v12, 1 }
 0x2e4   :  { %v228_v16 = vadd.f32 %v227_v4, %v226_v12 }
 0x35e   :  { %v205_v9 = vpop.xlane.xlu1 %204 }
 0x35f   :  { %306 = vrcp.f32 %v205_v9 }
 0x369   :  { %v307_v14 = vpop.eup %306 }
 0x36a   :  { %v238_v15 = vrot.slane %v307_v14, 1  ;;  %v241_v18 = vmul.f32 %v307_v14, %v228_v16 }
 0x36c   :  { %v242_v17 = vmul.f32 %v238_v15, %v235_v3 }
 0x36e   :  { %v245_v19 = vrot.slane %v242_v17, 7 }
 0x370   :  { %v246_v20 = vsel %vm161_vm2, %v245_v19, %v241_v18 }
 0x371   :  { %249 = vst.msk [vmem:[#allocation7] sm:$0x3] %vm248_vm4, %v246_v20 }
 0x372   :  { %363 = shalt.err (!%p360_p6)
}
 0x373   :  { %s364_s20 = scalar_lea.hbm %s477_s4, 32 }
 0x374   :  { %p365_p7 = scmp.ne.s32.totalorder %s477_s4, %s364_s20  ;;  %p368_p8 = scmp.lt.u32.totalorder %s364_s20, %s477_s4 }
 0x376   :  { %p370_p9 = pnand %p368_p8, %p365_p7 }
 0x378   :  { %373 = shalt.err (!%p370_p9)
}
 0x379   :  { %259 = dma.vmem_to_hbm [thread:$0]  %s257_s3, 32, %s477_s4, [#allocation4]  }
 0x37a   :  { %378 = dma.done.wait [#allocation4], 32  }
 0x37b   :  { %379 = vsyncadd [#allocation4], 4294967264 }
 0x37c   :  { %263 = vsyncpa [#allocation3], 1 }
 0x37d   :  { %264 = vsyncpa [#allocation6], 1 }
 0x37e   :  { %265 = vsyncpa [#allocation4], 1 }

// kernel: tpu_custom_call.1
= control target key start
LH: loop header
LB: loop body
LE: loop exit
PB: predicated region body
PF: predicated region fallthrough
CT: control target
= control target key end

     0   :  { %9 = vsyncpa [#allocation3], 0  ;;  %s473_s0 = inlined_call_operand.hbm [shape: bf16[2,8,32], index: 0, kind: input, shape index: {}]   ;;  %s474_s1 = inlined_call_operand.hbm [shape: bf16[32,32], index: 1, kind: input, shape index: {}]   ;;  %s475_s2 = inlined_call_operand.vmem [shape: bf16[1,32], index: 2, kind: input, shape index: {}]   ;;  %s476_s3 = inlined_call_operand.vmem [shape: bf16[1,32], index: 3, kind: input, shape index: {}]   ;;  %s477_s4 = inlined_call_operand.hbm [shape: f32[2,32], index: 4, kind: output, shape index: {}]  }
   0x1   :  { %10 = vsyncpa [#allocation6], 0 }
   0x2   :  { %11 = vsyncpa [#allocation4], 0  ;;  %s380_s15 = smov [#allocation2]   ;;  %s308_s19 = scalar_lea.hbm %s473_s0, 128 }
   0x3   :  { %s17_s16 = sshll.u32 %s380_s15, 4  ;;  %p309_p0 = scmp.ne.s32.totalorder %s473_s0, %s308_s19  ;;  %s18_s16 = int_to_ptr.vmem [resolvable:$true] %s17_s16 }
   0x4   :  { %p312_p1 = scmp.lt.u32.totalorder %s308_s19, %s473_s0 }
   0x6   :  { %p314_p2 = pnand %p312_p1, %p309_p0 }
   0x8   :  { %317 = shalt.err (!%p314_p2)
}
   0x9   :  { %s318_s24 = scalar_lea.vmem %s18_s16, 128  ;;  %p323_p4 = scmp.lt.s32.totalorder %s18_s16, %s18_s16 }
   0xa   :  { %p319_p3 = scmp.ne.s32.totalorder %s18_s16, %s318_s24  ;;  %p324_p5 = scmp.lt.s32.totalorder %s318_s24, %s318_s24 }
   0xc   :  { %p325_p6 = por %p324_p5, %p323_p4 }
   0xe   :  { %p326_p7 = pnand %p325_p6, %p319_p3 }
  0x10   :  { %329 = shalt.err (!%p326_p7)
}
  0x11   :  { %s381_s25 = smov 64   ;;  %s382_s26 = smov 4  }
  0x12   :  { %23 = dma.hbm_to_vmem [thread:$0]  %s473_s0, 128, %s18_s16, [#allocation3], %s381_s25, %s381_s25, %s382_s26  }
  0x13   :  { %s383_s29 = smov [#allocation5]   ;;  %s330_s7 = scalar_lea.hbm %s474_s1, 256 }
  0x14   :  { %s29_s30 = sshll.u32 %s383_s29, 4  ;;  %p331_p8 = scmp.ne.s32.totalorder %s474_s1, %s330_s7  ;;  %s30_s30 = int_to_ptr.vmem [resolvable:$true] %s29_s30 }
  0x15   :  { %p334_p9 = scmp.lt.u32.totalorder %s330_s7, %s474_s1 }
  0x17   :  { %p336_p10 = pnand %p334_p9, %p331_p8 }
  0x19   :  { %339 = shalt.err (!%p336_p10)
}
  0x1a   :  { %s340_s12 = scalar_lea.vmem %s30_s30, 256  ;;  %p345_p12 = scmp.lt.s32.totalorder %s30_s30, %s30_s30 }
  0x1b   :  { %p341_p11 = scmp.ne.s32.totalorder %s30_s30, %s340_s12  ;;  %p346_p13 = scmp.lt.s32.totalorder %s340_s12, %s340_s12 }
  0x1d   :  { %p347_p0 = por %p346_p13, %p345_p12 }
  0x1f   :  { %p348_p1 = pnand %p347_p0, %p341_p11 }
  0x21   :  { %351 = shalt.err (!%p348_p1)
}
  0x22   :  { %35 = dma.hbm_to_vmem [thread:$0]  %s474_s1, 256, %s30_s30, [#allocation6], %s381_s25, %s381_s25, %s382_s26  }
  0x23   :  { %374 = dma.done.wait [#allocation3], 128  }
  0x24   :  { %375 = vsyncadd [#allocation3], 4294967168 }
  0x25   :  { %376 = dma.done.wait [#allocation6], 256  }
  0x26   :  { %377 = vsyncadd [#allocation6], 4294967040  ;;  %v384_v0 = vmov 0.0   ;;  %vm385_vm0 = vmmov 0   ;;  %v295_v1 = vld [vmem:[#allocation5] sm:$0xff]   ;;  %v296_v2 = vld [vmem:[#allocation5 + $0x8] sm:$0xff]   ;;  %v55_v6 = vlaneseq }
  0x27   :  { %277 = vmatprep.subr.bf16.mxu0 %v384_v0  ;;  %281 = vmatprep.mubr.msk.bf16.mxu0 %vm385_vm0, %v384_v0  ;;  %v437_v3 = vld [vmem:[#allocation2] sm:$0xf]  ;;  %v439_v4 = vld [vmem:[#allocation2 + $0x4] sm:$0xf]  ;;  %vm76_vm1 = vcmask 261120   ;;  %vm161_vm2 = vcmask 1041409  }
  0x28   :  { %278 = vmatpush3.bf16.msra.mxu0 %v295_v1  ;;  %v266_v5 = vcombine.low %v437_v3, %v439_v4  ;;  %v56_v7 = vshrl.u32 %v55_v6, 7  ;;  %v53_v8 = vld [vmem:[%s475_s2] sm:$0x1]  ;;  %v152_v31 = vand.u32 127, %v55_v6  ;;  %vm164_vm3 = vcmask 58368   ;;  %s387_s2 = smov [#allocation7]  }
  0x29   :  { %279 = vmatprep.subr.bf16.mxu0 %v384_v0  ;;  %v54_v9 = vunpack.c.l.bf16 %v53_v8  ;;  %v131_v18 = vld [vmem:[%s476_s3] sm:$0x1]  ;;  %v386_v39 = vmov 0   ;;  %s256_s3 = sshll.u32 %s387_s2, 4  ;;  %vm248_vm4 = vcmask 254976   ;;  %s257_s3 = int_to_ptr.vmem [resolvable:$true] %s256_s3 }
  0x2a   :  { %v57_v10 = vsub.s32 0, %v56_v7  ;;  %v133_v19 = vpack.i.b16 %v131_v18, %v131_v18  ;;  %v155_v33 = vsub.s32 %v152_v31, %v56_v7  ;;  %294 = vset.pattern.permute.xlu0 %v386_v39  ;;  %293 = vset.pattern.permute.xlu1 %v386_v39  ;;  %v175_v40 = vsub.s32 1, %v56_v7  ;;  %s352_s17 = scalar_lea.vmem %s257_s3, 32  ;;  %p357_p3 = scmp.lt.s32.totalorder %s257_s3, %s257_s3 }
  0x2b   :  { %p353_p2 = scmp.ne.s32.totalorder %s257_s3, %s352_s17  ;;  %p358_p4 = scmp.lt.s32.totalorder %s352_s17, %s352_s17 }
  0x2c   :  { %280 = vmatpush3.bf16.msra.mxu0 %v296_v2  ;;  %v58_v11 = vrot.slane %v54_v9, %v57_v10  ;;  %v138_v20 = vrot.slane %v133_v19, %v57_v10 }
  0x2d   :  { %p359_p5 = por %p358_p4, %p357_p3 }
  0x2f   :  { %282 = vmatmul.mubr.msk.bf16.vlgmr.msra.gmra.mrb[0].mxu0 %vm76_vm1, %v266_v5  ;;  %p360_p6 = pnand %p359_p5, %p353_p2 }
 0x102   :  { %v114_v12 = vpop.f32.mrb[0].mxu0 }
 0x103   :  { %v115_v13 = vadd.f32 %v114_v12, %v58_v11  ;;  %v283_v14 = vpop.f32.mrb[1].mxu0 }
 0x104   :  { %v117_v15 = vpop.f32.mrb[2].mxu0 }
 0x105   :  { %298 = vtanh.f32 %v115_v13  ;;  %v118_v16 = vadd.f32 %v117_v15, %v58_v11  ;;  %v284_v17 = vpop.f32.mrb[3].mxu0 }
 0x107   :  { %300 = vtanh.f32 %v118_v16 }
 0x10f   :  { %v299_v21 = vpop.eup %298 }
 0x110   :  { %v272_v22 = vpack.c.bf16 %v299_v21, %v299_v21 }
 0x111   :  { %v301_v23 = vpop.eup %300 }
 0x112   :  { %v273_v24 = vpack.c.bf16 %v301_v23, %v301_v23  ;;  %v139_v25 = vmul.bf16 %v272_v22, %v138_v20 }
 0x114   :  { %v141_v26 = vunpack.c.l.bf16 %v139_v25  ;;  %v140_v27 = vmul.bf16 %v273_v24, %v138_v20 }
 0x116   :  { %v143_v28 = vsel %vm76_vm1, %v141_v26, 0.0  ;;  %v142_v29 = vunpack.c.l.bf16 %v140_v27 }
 0x117   :  { %144 = vadd.xlane.f32.xlu0 %v143_v28 }
 0x118   :  { %v146_v30 = vsel %vm76_vm1, %v142_v29, 0.0 }
 0x11b   :  { %147 = vadd.xlane.f32.xlu0 %v146_v30 }
 0x1a4   :  { %v145_v32 = vpop.xlane.xlu0 %144 }
 0x1a5   :  { %v156_v35 = vrot.slane %v145_v32, %v155_v33 }
 0x1a8   :  { %v148_v34 = vpop.xlane.xlu0 %147 }
 0x1a9   :  { %v160_v36 = vrot.slane %v148_v34, %v155_v33 }
 0x1ab   :  { %v162_v37 = vsel %vm161_vm2, %v160_v36, %v156_v35 }
 0x1ac   :  { %v165_v38 = vsel %vm164_vm3, %v162_v37, -inf }
 0x1ad   :  { %166 = vmax.xlane.f32.xlu1 %v165_v38 }
 0x23a   :  { %v167_v41 = vpop.xlane.xlu1 %166 }
 0x23b   :  { %v172_v42 = vrot.slane %v167_v41, %v57_v10  ;;  %v176_v43 = vrot.slane %v167_v41, %v175_v40 }
 0x23d   :  { %v179_v44 = vsub.f32 %v145_v32, %v172_v42  ;;  %v180_v45 = vsub.f32 %v148_v34, %v176_v43 }
 0x23f   :  { %v181_v46 = vmul.f32 1.442695, %v179_v44  ;;  %v183_v47 = vmul.f32 1.442695, %v180_v45 }
 0x241   :  { %302 = vpow2.f32 %v181_v46 }
 0x242   :  { %304 = vpow2.f32 %v183_v47 }
 0x24b   :  { %v303_v48 = vpop.eup %302 }
 0x24c   :  { %v305_v49 = vpop.eup %304  ;;  %188 = vperm.xlu1 %293, %v303_v48   ;;  %v206_v51 = vpack.c.bf16 %v303_v48, %v303_v48 }
 0x24d   :  { %191 = vperm.xlu0 %294, %v305_v49   ;;  %v207_v50 = vpack.c.bf16 %v305_v49, %v305_v49 }
 0x251   :  { %215 = vperm.xlu0 %294, %v207_v50  }
 0x255   :  { %210 = vperm.xlu0 %294, %v206_v51  }
 0x2cb   :  { %v189_v52 = vpop.permute.xlu1 %188 }
 0x2cc   :  { %v192_v53 = vpop.permute.xlu0 %191  ;;  %v196_v54 = vrot.slane %v189_v52, %v155_v33 }
 0x2cd   :  { %v200_v55 = vrot.slane %v192_v53, %v155_v33 }
 0x2cf   :  { %v201_v56 = vsel %vm161_vm2, %v200_v55, %v196_v54 }
 0x2d0   :  { %v203_v57 = vsel %vm164_vm3, %v201_v56, 0.0  ;;  %v216_v58 = vpop.permute.xlu0 %215 }
 0x2d1   :  { %204 = vadd.xlane.f32.xlu1 %v203_v57  ;;  %v219_v60 = vmul.bf16 %v216_v58, %v439_v4 }
 0x2d3   :  { %v221_v62 = vunpack.c.l.bf16 %v219_v60 }
 0x2d4   :  { %v211_v59 = vpop.permute.xlu0 %210 }
 0x2d5   :  { %v218_v61 = vmul.bf16 %v211_v59, %v437_v3  ;;  %v229_v0 = vsel %vm76_vm1, %v221_v62, 0.0 }
 0x2d6   :  { %v230_v2 = vrot.slane %v229_v0, 4 }
 0x2d7   :  { %v220_v63 = vunpack.c.l.bf16 %v218_v61 }
 0x2d8   :  { %v231_v6 = vadd.f32 %v230_v2, %v229_v0 }
 0x2d9   :  { %v222_v1 = vsel %vm76_vm1, %v220_v63, 0.0 }
 0x2da   :  { %v223_v5 = vrot.slane %v222_v1, 4  ;;  %v232_v8 = vrot.slane %v231_v6, 2 }
 0x2dc   :  { %v224_v7 = vadd.f32 %v223_v5, %v222_v1  ;;  %v233_v11 = vadd.f32 %v232_v8, %v231_v6 }
 0x2de   :  { %v225_v10 = vrot.slane %v224_v7, 2  ;;  %v234_v13 = vrot.slane %v233_v11, 1 }
 0x2e0   :  { %v226_v12 = vadd.f32 %v225_v10, %v224_v7  ;;  %v235_v3 = vadd.f32 %v234_v13, %v233_v11 }
 0x2e2   :  { %v227_v4 = vrot.slane %v226_v12, 1 }
 0x2e4   :  { %v228_v16 = vadd.f32 %v227_v4, %v226_v12 }
 0x35e   :  { %v205_v9 = vpop.xlane.xlu1 %204 }
 0x35f   :  { %306 = vrcp.f32 %v205_v9 }
 0x369   :  { %v307_v14 = vpop.eup %306 }
 0x36a   :  { %v238_v15 = vrot.slane %v307_v14, 1  ;;  %v241_v18 = vmul.f32 %v307_v14, %v228_v16 }
 0x36c   :  { %v242_v17 = vmul.f32 %v238_v15, %v235_v3 }
 0x36e   :  { %v245_v19 = vrot.slane %v242_v17, 7 }
 0x370   :  { %v246_v20 = vsel %vm161_vm2, %v245_v19, %v241_v18 }
 0x371   :  { %249 = vst.msk [vmem:[#allocation7] sm:$0x3] %vm248_vm4, %v246_v20 }
 0x372   :  { %363 = shalt.err (!%p360_p6)
}
 0x373   :  { %s364_s20 = scalar_lea.hbm %s477_s4, 32 }
 0x374   :  { %p365_p7 = scmp.ne.s32.totalorder %s477_s4, %s364_s20  ;;  %p368_p8 = scmp.lt.u32.totalorder %s364_s20, %s477_s4 }
 0x376   :  { %p370_p9 = pnand %p368_p8, %p365_p7 }
 0x378   :  { %373 = shalt.err (!%p370_p9)
}
 0x379   :  { %259 = dma.vmem_to_hbm [thread:$0]  %s257_s3, 32, %s477_s4, [#allocation4]  }
 0x37a   :  { %378 = dma.done.wait [#allocation4], 32  }
 0x37b   :  { %379 = vsyncadd [#allocation4], 4294967264 }
 0x37c   :  { %263 = vsyncpa [#allocation3], 1 }
 0x37d   :  { %264 = vsyncpa [#allocation6], 1 }
 0x37e   :  { %265 = vsyncpa [#allocation4], 1 }

</bundles_post_ra>
